<compile_context>
chip_gen: v7x
topology: tpu7x:2x2x1
jax: 0.10.0
libtpu: 0.0.40
codegen_flags: <defaults>
</compile_context>

<pallas_src>
import functools

import jax
import jax.numpy as jnp
from jax import lax
from jax.experimental import pallas as pl
from jax.experimental.pallas import tpu as pltpu

_MIB = 1024 * 1024


def _layernorm_kernel(x_ref, g_ref, o_ref, *, stable, eps, inv_feats, bf16_final):
    x = x_ref[...]                                    # (ROW_TILE, feats), input dtype
    if stable:
        # x / x.amax(dim=-1, keepdim=True)  (detach is a no-op in forward)
        x = x / jnp.max(x, axis=-1, keepdims=True)

    xf = x.astype(jnp.float32)
    # One-pass moments: both lane reductions are independent -> interleave on XLU.
    s = jnp.sum(xf, axis=-1, keepdims=True)
    sq = jnp.sum(xf * xf, axis=-1, keepdims=True)
    mean = s * inv_feats
    var = jnp.maximum(sq * inv_feats - mean * mean, 0.0)   # unbiased=False, clamped
    inv = lax.rsqrt(var + eps)                              # EUP

    g = g_ref[...]                                    # (1, feats), f32
    if bf16_final:
        # Keep the tile-sized elementwise pass in bf16 (v6e/v7x bf16 VALU).
        cd = x.dtype
        out = (x - mean.astype(cd)) * inv.astype(cd) * g.astype(cd)
    else:
        out = (xf - mean) * inv * g
    o_ref[...] = out.astype(o_ref.dtype)


def _vmem_capacity_bytes():
    try:
        return int(pltpu.get_tpu_info().vmem_capacity_bytes)
    except Exception:
        return 64 * _MIB      # conservative fallback (v7x per-TensorCore VMEM)


def _bf16_final_pass(dtype):
    if jnp.dtype(dtype) != jnp.bfloat16:
        return False
    try:
        kind = jax.devices()[0].device_kind.lower()
    except Exception:
        return True
    # v5e has no bf16 VALU; keep the big elementwise pass in f32 there.
    return ("v5 lite" not in kind) and ("v5e" not in kind) and ("v5lite" not in kind)


def _select_tiling(rows, feats, itemsize):
    """VMEM-budgeted, generation-aware row tile + scoped-VMEM limit."""
    vmem_cap = _vmem_capacity_bytes()
    bytes_per_row = feats * itemsize

    # in + out blocks, each double-buffered -> ~4 block-sized VMEM buffers.
    budget = vmem_cap // 3                       # leave headroom for g / compiler scratch
    block_bytes_max = max(budget // 4, 8 * bytes_per_row)
    target_block_bytes = min(4 * _MIB, block_bytes_max)

    row_tile = max(8, (target_block_bytes // bytes_per_row) // 8 * 8)
    rows_ceil8 = ((rows + 7) // 8) * 8
    row_tile = min(row_tile, rows_ceil8)         # both multiples of 8 -> still multiple of 8

    needed = 4 * row_tile * bytes_per_row + feats * 4 + 2 * _MIB
    vmem_limit = int(min(max(vmem_cap // 2, needed), vmem_cap - 2 * _MIB))
    return row_tile, vmem_limit


def layer_norm(x, g, *, stable: bool = False):
    """Pallas LayerNorm over the last axis, matching the PyTorch module with dim=-1."""
    orig_shape = x.shape
    feats = orig_shape[-1]
    assert g.shape[-1] == feats

    rows = 1
    for d in orig_shape[:-1]:
        rows *= d

    x2 = x.reshape(rows, feats)
    g2 = g.reshape(1, feats).astype(jnp.float32)   # pre-cast once in the wrapper

    # eps depends on dtype, as in the PyTorch module
    eps = 1e-05 if x.dtype == jnp.float32 else 1e-03

    itemsize = jnp.dtype(x.dtype).itemsize
    row_tile, vmem_limit = _select_tiling(rows, feats, itemsize)

    # Pad rows up to a multiple of the tile so execution is always tiled/pipelined.
    rows_padded = pl.cdiv(rows, row_tile) * row_tile
    if rows_padded != rows:
        x2 = jnp.pad(x2, ((0, rows_padded - rows), (0, 0)))

    grid = (rows_padded // row_tile,)

    kernel = functools.partial(
        _layernorm_kernel,
        stable=stable,
        eps=eps,
        inv_feats=1.0 / float(feats),
        bf16_final=_bf16_final_pass(x.dtype),
    )

    out2 = pl.pallas_call(
        kernel,
        out_shape=jax.ShapeDtypeStruct((rows_padded, feats), x.dtype),
        grid_spec=pltpu.PrefetchScalarGridSpec(
            num_scalar_prefetch=0,
            grid=grid,
            in_specs=[
                pl.BlockSpec((row_tile, feats), lambda i: (i, 0)),
                pl.BlockSpec((1, feats), lambda i: (0, 0)),
            ],
            out_specs=pl.BlockSpec((row_tile, feats), lambda i: (i, 0)),
        ),
        compiler_params=pltpu.CompilerParams(
            dimension_semantics=("parallel",),
            vmem_limit_bytes=vmem_limit,
        ),
    )(x2, g2)

    if rows_padded != rows:
        out2 = out2[:rows]
    return out2.reshape(orig_shape)


def _reference_layer_norm(x, g, *, stable=False):
    # Pure-JAX reference mirroring the PyTorch forward.
    if stable:
        x = x / jnp.max(x, axis=-1, keepdims=True)
    eps = 1e-05 if x.dtype == jnp.float32 else 1e-03
    mean = jnp.mean(x, axis=-1, keepdims=True)
    var = jnp.mean((x - mean) ** 2, axis=-1, keepdims=True)
    return (x - mean) * lax.rsqrt(var + eps) * g


if __name__ == "__main__":
    key = jax.random.PRNGKey(0)

    batch, seq, feats = 2, 8, 32
    x = jax.random.normal(key, (batch, seq, feats), dtype=jnp.float32)

    # nn.Parameter(torch.ones(feats)) for dim=-1
    g = jnp.ones((feats,), dtype=jnp.float32)

    out = layer_norm(x, g, stable=False)
    out = jax.block_until_ready(out)

    ref = _reference_layer_norm(x, g, stable=False)
    assert out.shape == x.shape and out.dtype == x.dtype
    assert jnp.allclose(out, ref, atol=1e-5, rtol=1e-5)

    # Also exercise the stable=True path once.
    out_s = jax.block_until_ready(layer_norm(x, g, stable=True))
    ref_s = _reference_layer_norm(x, g, stable=True)
    assert jnp.allclose(out_s, ref_s, atol=1e-5, rtol=1e-5)

    # Exercise a ragged row count (rows not a multiple of 8) to hit the padding path.
    x_r = jax.random.normal(key, (3, 5, feats), dtype=jnp.float32)
    out_r = jax.block_until_ready(layer_norm(x_r, g))
    assert jnp.allclose(out_r, _reference_layer_norm(x_r, g), atol=1e-5, rtol=1e-5)

    print("KERNEL_OK")
</pallas_src>

<mosaic_0001>
module attributes {stable_mosaic.version = 11 : i64} {
  func.func @_layernorm_kernel(%arg0: i32, %arg1: memref<16x32xf32, #tpu.memory_space<vmem>>, %arg2: memref<1x32xf32, #tpu.memory_space<vmem>>, %arg3: memref<16x32xf32, #tpu.memory_space<vmem>>) attributes {dimension_semantics = [#tpu.dimension_semantics<parallel>], iteration_bounds = array<i64: 1>, scalar_prefetch = 0 : i64, scratch_operands = 0 : i64, tpu.core_type = #tpu.core_type<tc>, window_params = [{transform_indices = @transform_0, window_bounds = array<i64: 16, 32>}, {pipeline_mode = #tpu.pipeline_mode<synchronous>, transform_indices = @transform_1, window_bounds = array<i64: 1, 32>}, {transform_indices = @transform_2, window_bounds = array<i64: 16, 32>}]} {
    %c0 = arith.constant 0 : index
    %c0_0 = arith.constant 0 : index
    %0 = vector.load %arg1[%c0, %c0_0] : memref<16x32xf32, #tpu.memory_space<vmem>>, vector<16x32xf32>
    %cst = arith.constant dense<0.000000e+00> : vector<16xf32>
    %1 = vector.multi_reduction <add>, %0, %cst [1] : vector<16x32xf32> to vector<16xf32>
    %2 = vector.shape_cast %1 : vector<16xf32> to vector<16x1xf32>
    %3 = arith.mulf %0, %0 : vector<16x32xf32>
    %cst_1 = arith.constant dense<0.000000e+00> : vector<16xf32>
    %4 = vector.multi_reduction <add>, %3, %cst_1 [1] : vector<16x32xf32> to vector<16xf32>
    %5 = vector.shape_cast %4 : vector<16xf32> to vector<16x1xf32>
    %cst_2 = arith.constant 3.125000e-02 : f32
    %6 = vector.broadcast %cst_2 : f32 to vector<16x1xf32>
    %7 = arith.mulf %2, %6 : vector<16x1xf32>
    %cst_3 = arith.constant 3.125000e-02 : f32
    %8 = vector.broadcast %cst_3 : f32 to vector<16x1xf32>
    %9 = arith.mulf %5, %8 : vector<16x1xf32>
    %10 = arith.mulf %7, %7 : vector<16x1xf32>
    %11 = arith.subf %9, %10 : vector<16x1xf32>
    %cst_4 = arith.constant 0.000000e+00 : f32
    %12 = vector.broadcast %cst_4 : f32 to vector<16x1xf32>
    %13 = arith.maximumf %11, %12 : vector<16x1xf32>
    %cst_5 = arith.constant 9.99999974E-6 : f32
    %14 = vector.broadcast %cst_5 : f32 to vector<16x1xf32>
    %15 = arith.addf %13, %14 : vector<16x1xf32>
    %16 = math.rsqrt %15 : vector<16x1xf32>
    %c0_6 = arith.constant 0 : index
    %c0_7 = arith.constant 0 : index
    %17 = vector.load %arg2[%c0_6, %c0_7] : memref<1x32xf32, #tpu.memory_space<vmem>>, vector<1x32xf32>
    %18 = vector.broadcast %7 : vector<16x1xf32> to vector<16x32xf32>
    %19 = arith.subf %0, %18 : vector<16x32xf32>
    %20 = vector.broadcast %16 : vector<16x1xf32> to vector<16x32xf32>
    %21 = arith.mulf %19, %20 : vector<16x32xf32>
    %22 = vector.broadcast %17 : vector<1x32xf32> to vector<16x32xf32>
    %23 = arith.mulf %21, %22 : vector<16x32xf32>
    %c0_8 = arith.constant 0 : index
    %c0_9 = arith.constant 0 : index
    %24 = vector.load %arg3[%c0_8, %c0_9] : memref<16x32xf32, #tpu.memory_space<vmem>>, vector<16x32xf32>
    tpu.vector_store %arg3[%c0_8, %c0_9], %23 {strides = array<i32>} : memref<16x32xf32, #tpu.memory_space<vmem>>, vector<16x32xf32>,
    return
  }
  func.func @transform_0(%arg0: i32) -> (i32, i32) {
    %c0_i32 = arith.constant 0 : i32
    %c0_i32_0 = arith.constant 0 : i32
    return %arg0, %c0_i32 : i32, i32
  }
  func.func @transform_1(%arg0: i32) -> (i32, i32) {
    %c0_i32 = arith.constant 0 : i32
    %c0_i32_0 = arith.constant 0 : i32
    %c0_i32_1 = arith.constant 0 : i32
    return %c0_i32, %c0_i32_0 : i32, i32
  }
  func.func @transform_2(%arg0: i32) -> (i32, i32) {
    %c0_i32 = arith.constant 0 : i32
    %c0_i32_0 = arith.constant 0 : i32
    return %arg0, %c0_i32 : i32, i32
  }
}

</mosaic_0001>

<bundles_post_ra>
// kernel: tpu_custom_call.1
= control target key start
LH: loop header
LB: loop body
LE: loop exit
PB: predicated region body
PF: predicated region fallthrough
CT: control target
= control target key end

     0   :  { %7 = vsyncpa [#allocation3], 0  ;;  %s204_s0 = inlined_call_operand.hbm [shape: f32[16,32], index: 0, kind: input, shape index: {}]   ;;  %s205_s1 = inlined_call_operand.vmem [shape: f32[1,32], index: 1, kind: input, shape index: {}]   ;;  %s206_s2 = inlined_call_operand.hbm [shape: f32[16,32], index: 2, kind: output, shape index: {}]  }
   0x1   :  { %8 = vsyncpa [#allocation4], 0  ;;  %s146_s9 = smov [#allocation2]   ;;  %s98_s13 = scalar_lea.hbm %s204_s0, 256 }
   0x2   :  { %s14_s10 = sshll.u32 %s146_s9, 4  ;;  %p99_p0 = scmp.ne.s32.totalorder %s204_s0, %s98_s13  ;;  %s15_s10 = int_to_ptr.vmem [resolvable:$true] %s14_s10 }
   0x3   :  { %p102_p1 = scmp.lt.u32.totalorder %s98_s13, %s204_s0 }
   0x5   :  { %p104_p2 = pnand %p102_p1, %p99_p0 }
   0x7   :  { %107 = shalt.err (!%p104_p2)
}
   0x8   :  { %s108_s18 = scalar_lea.vmem %s15_s10, 256  ;;  %p113_p4 = scmp.lt.s32.totalorder %s15_s10, %s15_s10 }
   0x9   :  { %p109_p3 = scmp.ne.s32.totalorder %s15_s10, %s108_s18  ;;  %p114_p5 = scmp.lt.s32.totalorder %s108_s18, %s108_s18 }
   0xb   :  { %p115_p6 = por %p114_p5, %p113_p4 }
   0xd   :  { %p116_p7 = pnand %p115_p6, %p109_p3 }
   0xf   :  { %119 = shalt.err (!%p116_p7)
}
  0x10   :  { %s147_s19 = smov 128   ;;  %s148_s20 = smov 8  }
  0x11   :  { %20 = dma.hbm_to_vmem [thread:$0]  %s204_s0, 256, %s15_s10, [#allocation3], %s147_s19, %s147_s19, %s148_s20  }
  0x12   :  { %142 = dma.done.wait [#allocation3], 256  }
  0x13   :  { %143 = vsyncadd [#allocation3], 4294967040  ;;  %vm28_vm0 = vcmask 261120   ;;  %v26_v0 = vld [vmem:[#allocation2] sm:$0xff]  ;;  %v27_v1 = vld [vmem:[#allocation2 + $0x8] sm:$0xff]  ;;  %s149_s24 = smov [#allocation5]  }
  0x14   :  { %v29_v2 = vsel %vm28_vm0, %v26_v0, 0.0  ;;  %v35_v3 = vmul.f32 %v26_v0, %v26_v0  ;;  %v36_v4 = vmul.f32 %v27_v1, %v27_v1  ;;  %v32_v6 = vsel %vm28_vm0, %v27_v1, 0.0  ;;  %v89_v26 = vld [vmem:[%s205_s1] ss:$0 sm:$0xff]  ;;  %s77_s25 = sshll.u32 %s149_s24, 4  ;;  %s78_s25 = int_to_ptr.vmem [resolvable:$true] %s77_s25 }
  0x15   :  { %30 = vadd.xlane.f32.xlu0 %v29_v2  ;;  %s120_s26 = scalar_lea.vmem %s78_s25, 256  ;;  %p125_p9 = scmp.lt.s32.totalorder %s78_s25, %s78_s25 }
  0x16   :  { %v37_v5 = vsel %vm28_vm0, %v35_v3, 0.0  ;;  %v40_v7 = vsel %vm28_vm0, %v36_v4, 0.0  ;;  %p121_p8 = scmp.ne.s32.totalorder %s78_s25, %s120_s26  ;;  %p126_p10 = scmp.lt.s32.totalorder %s120_s26, %s120_s26 }
  0x17   :  { %38 = vadd.xlane.f32.xlu1 %v37_v5 }
  0x18   :  { %p127_p11 = por %p126_p10, %p125_p9 }
  0x19   :  { %33 = vadd.xlane.f32.xlu0 %v32_v6 }
  0x1a   :  { %p128_p12 = pnand %p127_p11, %p121_p8 }
  0x1b   :  { %41 = vadd.xlane.f32.xlu1 %v40_v7 }
  0xa2   :  { %v31_v8 = vpop.xlane.xlu0 %30 }
  0xa3   :  { %v43_v9 = vmul.f32 0.03125, %v31_v8 }
  0xa4   :  { %v39_v10 = vpop.xlane.xlu1 %38 }
  0xa5   :  { %v47_v11 = vmul.f32 %v43_v9, %v43_v9  ;;  %v45_v12 = vmul.f32 0.03125, %v39_v10  ;;  %v58_v24 = vsub.f32 %v26_v0, %v43_v9 }
  0xa6   :  { %v34_v13 = vpop.xlane.xlu0 %33 }
  0xa7   :  { %v49_v14 = vsub.f32 %v45_v12, %v47_v11  ;;  %v44_v15 = vmul.f32 0.03125, %v34_v13 }
  0xa8   :  { %v42_v16 = vpop.xlane.xlu1 %41 }
  0xa9   :  { %v51_v17 = vmax.f32 %v49_v14, 0.0  ;;  %v48_v18 = vmul.f32 %v44_v15, %v44_v15  ;;  %v46_v19 = vmul.f32 0.03125, %v42_v16  ;;  %v59_v28 = vsub.f32 %v27_v1, %v44_v15 }
  0xab   :  { %v53_v20 = vadd.f32 1e-05, %v51_v17  ;;  %v50_v21 = vsub.f32 %v46_v19, %v48_v18 }
  0xad   :  { %94 = vrsqrt.f32 %v53_v20  ;;  %v52_v22 = vmax.f32 %v50_v21, 0.0 }
  0xaf   :  { %v54_v23 = vadd.f32 1e-05, %v52_v22 }
  0xb1   :  { %96 = vrsqrt.f32 %v54_v23 }
  0xb7   :  { %v95_v25 = vpop.eup %94 }
  0xb8   :  { %v60_v27 = vmul.f32 %v95_v25, %v58_v24 }
  0xba   :  { %v68_v29 = vmul.f32 %v89_v26, %v60_v27 }
  0xbb   :  { %v97_v30 = vpop.eup %96 }
  0xbc   :  { %v61_v31 = vmul.f32 %v97_v30, %v59_v28  ;;  %70 = vst.msk [vmem:[#allocation5] sm:$0xff] %vm28_vm0, %v68_v29 }
  0xbe   :  { %v69_v32 = vmul.f32 %v89_v26, %v61_v31 }
  0xc0   :  { %71 = vst.msk [vmem:[#allocation5 + $0x8] sm:$0xff] %vm28_vm0, %v69_v32 }
  0xc1   :  { %131 = shalt.err (!%p128_p12)
}
  0xc2   :  { %s132_s28 = scalar_lea.hbm %s206_s2, 256 }
  0xc3   :  { %p133_p13 = scmp.ne.s32.totalorder %s206_s2, %s132_s28  ;;  %p136_p0 = scmp.lt.u32.totalorder %s132_s28, %s206_s2 }
  0xc5   :  { %p138_p1 = pnand %p136_p0, %p133_p13 }
  0xc7   :  { %141 = shalt.err (!%p138_p1)
}
  0xc8   :  { %83 = dma.vmem_to_hbm [thread:$0]  %s78_s25, 256, %s206_s2, [#allocation4], %s147_s19, %s147_s19, %s148_s20  }
  0xc9   :  { %144 = dma.done.wait [#allocation4], 256  }
  0xca   :  { %145 = vsyncadd [#allocation4], 4294967040 }
  0xcb   :  { %87 = vsyncpa [#allocation3], 1 }
  0xcc   :  { %88 = vsyncpa [#allocation4], 1 }

</bundles_post_ra>
